<compile_context>
chip_gen: v6e
topology: v6e:2x2x1
jax: 0.10.0
libtpu: 0.0.40
codegen_flags: <defaults>
</compile_context>

<pallas_src>
import functools

import numpy as np
import jax
import jax.numpy as jnp
from jax import lax
from jax.experimental import pallas as pl
from jax.experimental.pallas import tpu as pltpu


def _round_up(x, m):
    return (x + m - 1) // m * m


def _tpu_vmem_bytes(default=64 * 1024 * 1024):
    try:
        return int(pltpu.get_tpu_info().vmem_capacity_bytes)
    except Exception:
        return default          # conservative (v7x-sized) fallback


def _num_tensorcores():
    # v5e / v6e have a single TensorCore per chip; v7x has two.
    try:
        kind = jax.devices()[0].device_kind.lower()
    except Exception:
        return 1
    return 2 if "v7" in kind else 1


def _gdml_kernel(xs_ref, xs_sq_ref, stk_ref, cst_ref, es_ref, fsx_ref, *, sig):
    """One (TB queries) x (TM training points) tile.

    Grid = (batch tile b, parallel slab p, reduction step s).  Outputs are
    resident across the reduction axis and accumulated in place.
    """
    s = pl.program_id(2)

    @pl.when(s == 0)
    def _():
        es_ref[...] = jnp.zeros_like(es_ref)
        fsx_ref[...] = jnp.zeros_like(fsx_ref)

    xs = xs_ref[...]                                    # (TB, D) f32, resident
    xs_sq = xs_sq_ref[...]                              # (TB, 1) f32, hoisted
    stk = stk_ref[...].astype(jnp.float32)              # (2*TM, D): [xst ; jxa]
    tm = stk.shape[0] // 2
    cst = cst_ref[...]                                   # (2, TM) f32
    xst_sq = cst[0:1, :]                                 # ||xst||^2 (rounded vals)
    dotxj = cst[1:2, :]                                  # sum_d xst*jxa

    # One fused MXU call yields both xs.xst (cross) and xs.jxa (xjdot).
    both = lax.dot_general(xs, stk, (((1,), (1,)), ((), ())),
                           preferred_element_type=jnp.float32)     # (TB, 2*TM)
    cross = both[:, :tm]
    xjdot = both[:, tm:]

    # ||xs - xst||^2 = ||xs||^2 + ||xst||^2 - 2 xs.xst.  xst_sq is built from
    # the streamed (rounded) xst, so the expansion is consistent; the clamp
    # absorbs f32 cancellation.  For queries essentially on top of a training
    # point a direct-difference formulation would be more accurate.
    sq = jnp.maximum(xs_sq + xst_sq - 2.0 * cross, 0.0)
    x_dists = jnp.sqrt(5.0 * sq)                                    # sqrt(5)*||d||
    Ks = (5.0 / (3.0 * sig ** 3)) * jnp.exp(-x_dists * (1.0 / sig))
    tmp1 = xjdot - dotxj                               # sum_d (xs - xst) * jxa
    tmp2 = (x_dists + sig) * Ks

    # Energy partial (zero-padded training columns have tmp1 == 0 -> inert).
    es_ref[...] += jnp.sum(tmp1 * tmp2, axis=-1, keepdims=True)      # (TB, 1)

    # Fs_x partial:
    #   5/sig * sum_m (Ks*tmp1)(xs - xst) - tmp2 @ jxa
    # = 5/sig * coef_sum * xs + [-(5/sig)*coef | -tmp2] @ [xst ; jxa]
    coef = Ks * tmp1                                                 # (TB, TM)
    coef_sum = jnp.sum(coef, axis=-1, keepdims=True)                 # (TB, 1)
    lhs = jnp.concatenate([coef * (-5.0 / sig), -tmp2], axis=-1)     # (TB, 2*TM)
    fsx_ref[...] += (5.0 / sig) * coef_sum * xs + lax.dot_general(
        lhs, stk, (((1,), (0,)), ((), ())),
        preferred_element_type=jnp.float32)                          # (TB, D)


def gdml_pallas_core(xs, xs_train, Jx_alphas, *, sig, tile_m=None, tile_b=None,
                     stream_dtype=jnp.bfloat16):
    B, D = xs.shape
    M = xs_train.shape[0]
    f32 = jnp.float32

    vmem_cap = _tpu_vmem_bytes()
    n_tc = _num_tensorcores()
    elem = jnp.dtype(stream_dtype).itemsize

    # Query tile (sublane axis). Small batches stay fully resident; large
    # batches are tiled at 256 rows to bound the (TB, TM) intermediates while
    # still filling MXU rows.
    if tile_b is None:
        tile_b = min(_round_up(B, 8), 256)
    tile_b = _round_up(int(tile_b), 8)
    B_pad = _round_up(B, tile_b)
    nb = B_pad // tile_b

    # Training-point tile (128-aligned lane axis of the (TB, TM) score tiles).
    # Budget accounts for: double-buffered [xst;jxa]+csts streams, resident
    # xs/xs_sq, double-buffered outputs and ~(TB, TM) f32 intermediates.
    if tile_m is None:
        budget = int(vmem_cap * 0.55)
        fixed = 4 * tile_b * (D + 1) * 4                    # xs/xs_sq + outputs (x2 bufs)
        per_m = 2 * (2 * D * elem + 2 * 4) + 14 * tile_b * 4
        tile_m = max(128, ((budget - fixed) // max(per_m, 1)) // 128 * 128)
        tile_m = min(tile_m, 8192)
    tile_m = int(min(_round_up(int(tile_m), 128), _round_up(M, 128)))

    n_tiles = -(-M // tile_m)
    n_par = n_tc if n_tiles >= n_tc else 1                  # 2 slabs only on v7x
    n_tiles = _round_up(n_tiles, n_par)
    steps = n_tiles // n_par                                # fast path: steps == 1
    M_pad = n_tiles * tile_m

    # --- host-side packing (all zero padding is mathematically inert) ---
    xs_p = jnp.zeros((B_pad, D), f32).at[:B, :].set(xs.astype(f32))
    xs_sq = jnp.sum(xs_p * xs_p, axis=-1, keepdims=True)    # (B_pad, 1), hoisted

    xst_s = xs_train.astype(stream_dtype)
    jxa_s = Jx_alphas.astype(stream_dtype)
    xst_pad = jnp.zeros((M_pad, D), stream_dtype).at[:M, :].set(xst_s)
    jxa_pad = jnp.zeros((M_pad, D), stream_dtype).at[:M, :].set(jxa_s)
    # Interleave per tile: rows [xst tile ; jxa tile] -> one DMA per step.
    stk = jnp.concatenate(
        [xst_pad.reshape(n_tiles, tile_m, D),
         jxa_pad.reshape(n_tiles, tile_m, D)], axis=1,
    ).reshape(n_tiles * 2 * tile_m, D)

    # Per-training-point constants, from the *streamed* (rounded) values so the
    # expanded squared distance is consistent with `stk`.
    xst_f = xst_s.astype(f32)
    jxa_f = jxa_s.astype(f32)
    csts = jnp.zeros((2, M_pad), f32)
    csts = csts.at[0, :M].set(jnp.sum(xst_f * xst_f, axis=-1))
    csts = csts.at[1, :M].set(jnp.sum(xst_f * jxa_f, axis=-1))

    kern = functools.partial(_gdml_kernel, sig=float(sig))

    stk_spec_kw = {}
    if steps >= 4 and n_tc == 1 and hasattr(pl, "Buffered"):
        # Deeper pipelining on 128 MiB-VMEM single-TC chips (v5e/v6e); keep
        # default double buffering on 64 MiB-VMEM v7x.
        stk_spec_kw["pipeline_mode"] = pl.Buffered(3)

    in_specs = [
        pl.BlockSpec((tile_b, D), lambda b, p, s: (b, 0)),              # xs (resident)
        pl.BlockSpec((tile_b, 1), lambda b, p, s: (b, 0)),              # ||xs||^2
        pl.BlockSpec((2 * tile_m, D),
                     lambda b, p, s: (p * steps + s, 0),
                     **stk_spec_kw),                                    # [xst;jxa] stream
        pl.BlockSpec((2, tile_m),
                     lambda b, p, s: (0, p * steps + s)),               # [||xst||^2;xst.jxa]
    ]
    out_specs = [
        pl.BlockSpec((None, tile_b, 1), lambda b, p, s: (p, b, 0)),
        pl.BlockSpec((None, tile_b, D), lambda b, p, s: (p, b, 0)),
    ]

    vmem_limit = int(min(100 * 1024 * 1024,
                         max(32 * 1024 * 1024, vmem_cap * 3 // 4)))

    es_out, fsx_out = pl.pallas_call(
        kern,
        out_shape=(
            jax.ShapeDtypeStruct((n_par, B_pad, 1), f32),
            jax.ShapeDtypeStruct((n_par, B_pad, D), f32),
        ),
        grid_spec=pltpu.PrefetchScalarGridSpec(
            num_scalar_prefetch=0,
            grid=(nb, n_par, steps),
            in_specs=in_specs,
            out_specs=out_specs,
        ),
        compiler_params=pltpu.CompilerParams(
            dimension_semantics=("parallel", "parallel", "arbitrary"),
            vmem_limit_bytes=vmem_limit),
    )(xs_p, xs_sq, stk, csts)

    es_part = jnp.sum(es_out[:, :B, 0], axis=0)          # (B,)
    fs_x = jnp.sum(fsx_out[:, :B, :], axis=0)            # (B, D)
    return es_part, fs_x


def _expand_tril(xs_flat, n):
    """JAX port of expand_tril: (B, n*(n-1)/2) -> symmetric (B, n, n), 0 diag."""
    i, j = np.tril_indices(n, k=-1)
    B = xs_flat.shape[0]
    full = jnp.zeros((B, n, n), dtype=xs_flat.dtype)
    full = full.at[:, i, j].set(xs_flat)
    full = full.at[:, j, i].set(xs_flat)
    return full


def gdml_forward(Rs, xs_train, Jx_alphas, *, sig, c, std, tile_m=None,
                 tile_b=None, stream_dtype=jnp.bfloat16):
    assert Rs.ndim == 3 and Rs.shape[-1] == 3
    B, n_atoms, _ = Rs.shape

    # --- glue: descriptor from coordinates (plain JAX gather) ---
    diff = Rs[:, :, None, :] - Rs[:, None, :, :]                  # (B, n, n, 3)
    dists = jnp.sqrt(jnp.sum(diff * diff, axis=-1))               # (B, n, n)
    d_idx = np.arange(n_atoms)
    dists = dists.at[:, d_idx, d_idx].set(jnp.inf)
    ti, tj = np.tril_indices(n_atoms, k=-1)
    xs = 1.0 / dists[:, ti, tj]                                   # (B, D)

    # --- hot path in Pallas ---
    es_part, fs_x = gdml_pallas_core(xs, xs_train, Jx_alphas, sig=sig,
                                     tile_m=tile_m, tile_b=tile_b,
                                     stream_dtype=stream_dtype)

    Es = c + es_part * std                                        # (B,)

    # --- glue: map descriptor-space forces back to Cartesian (scatter) ---
    fs_full = _expand_tril(fs_x * std, n_atoms)                   # (B, n, n)
    Fs = jnp.sum((fs_full / dists ** 3)[:, :, :, None] * diff, axis=1)  # (B, n, 3)
    return Es, Fs


def _reference_forward(Rs, xs_train, Jx_alphas, *, sig, c, std):
    """Pure-JAX direct port of the PyTorch module (for verification)."""
    B, n_atoms, _ = Rs.shape
    diff = Rs[:, :, None, :] - Rs[:, None, :, :]
    dists = jnp.sqrt(jnp.sum(diff * diff, axis=-1))
    d_idx = np.arange(n_atoms)
    dists = dists.at[:, d_idx, d_idx].set(jnp.inf)
    ti, tj = np.tril_indices(n_atoms, k=-1)
    xs = 1.0 / dists[:, ti, tj]

    x_diffs = xs[:, None, :] - xs_train[None, :, :]
    x_dists = np.sqrt(5.0) * jnp.sqrt(jnp.sum(x_diffs ** 2, axis=-1))
    Ks = 5.0 / (3.0 * sig ** 3) * jnp.exp(-x_dists / sig)
    tmp1 = jnp.sum(x_diffs * Jx_alphas[None, :, :], axis=-1)
    tmp2 = (x_dists + sig) * Ks
    Fs_x = (5.0 / sig) * jnp.sum((Ks * tmp1)[:, :, None] * x_diffs, axis=1) \
        - tmp2 @ Jx_alphas
    Es = c + jnp.sum(tmp1 * tmp2, axis=-1) * std
    fs_full = _expand_tril(Fs_x * std, n_atoms)
    Fs = jnp.sum((fs_full / dists ** 3)[:, :, :, None] * diff, axis=1)
    return Es, Fs


if __name__ == "__main__":
    key = jax.random.PRNGKey(0)
    k_r, k_x, k_a = jax.random.split(key, 3)

    # Small synthetic "model": n_atoms=8 -> desc dim D=28. M=200 is NOT a
    # multiple of the tile so zero-padded training rows are exercised.
    B, n_atoms = 2, 8
    D = n_atoms * (n_atoms - 1) // 2
    M = 200
    sig, c, std = 10.0, 0.5, 1.2

    Rs = jax.random.normal(k_r, (B, n_atoms, 3), dtype=jnp.float32) * 2.0
    xs_train = jax.random.uniform(k_x, (M, D), dtype=jnp.float32,
                                  minval=0.1, maxval=1.0)
    Jx_alphas = jax.random.normal(k_a, (M, D), dtype=jnp.float32) * 0.1

    # 1) Default path: bf16 streaming + auto tiling (single-step fast path).
    fwd = jax.jit(functools.partial(gdml_forward, sig=sig, c=c, std=std))
    Es, Fs = fwd(Rs, xs_train, Jx_alphas)
    jax.block_until_ready((Es, Fs))
    assert Es.shape == (B,) and Fs.shape == (B, n_atoms, 3)

    # 2) f32 streaming with tile_m=128 -> exercises multi-step accumulation.
    fwd32 = jax.jit(functools.partial(gdml_forward, sig=sig, c=c, std=std,
                                      tile_m=128, stream_dtype=jnp.float32))
    Es32, Fs32 = fwd32(Rs, xs_train, Jx_alphas)
    jax.block_until_ready((Es32, Fs32))

    # References: exact f32, and a bf16-consistent one (same rounded params
    # the default kernel streams).
    Es_ref, Fs_ref = _reference_forward(Rs, xs_train, Jx_alphas,
                                        sig=sig, c=c, std=std)
    xst_r = xs_train.astype(jnp.bfloat16).astype(jnp.float32)
    jxa_r = Jx_alphas.astype(jnp.bfloat16).astype(jnp.float32)
    Es_rb, Fs_rb = _reference_forward(Rs, xst_r, jxa_r, sig=sig, c=c, std=std)

    def _check(a, b, rtol, atol_scale):
        scale = float(jnp.max(jnp.abs(b))) + 1.0
        np.testing.assert_allclose(np.asarray(a), np.asarray(b),
                                   rtol=rtol, atol=atol_scale * scale)

    # f32-streamed path: tight against the exact reference.
    _check(Es32, Es_ref, 2e-3, 1e-4)
    _check(Fs32, Fs_ref, 2e-3, 1e-4)
    # bf16-streamed path: tight against the bf16-consistent reference,
    # loose sanity check against the exact one.
    _check(Es, Es_rb, 2e-3, 1e-4)
    _check(Fs, Fs_rb, 2e-3, 1e-4)
    _check(Es, Es_ref, 5e-2, 1e-2)
    _check(Fs, Fs_ref, 5e-2, 1e-2)

    print("KERNEL_OK")
</pallas_src>

<mosaic_0001>
module attributes {stable_mosaic.version = 11 : i64} {
  func.func @_gdml_kernel(%arg0: i32, %arg1: i32, %arg2: i32, %arg3: memref<8x28xf32, #tpu.memory_space<vmem>>, %arg4: memref<8x1xf32, #tpu.memory_space<vmem>>, %arg5: memref<512x28xbf16, #tpu.memory_space<vmem>>, %arg6: memref<2x256xf32, #tpu.memory_space<vmem>>, %arg7: memref<1x8x1xf32, #tpu.memory_space<vmem>>, %arg8: memref<1x8x28xf32, #tpu.memory_space<vmem>>) attributes {dimension_semantics = [#tpu.dimension_semantics<parallel>, #tpu.dimension_semantics<parallel>, #tpu.dimension_semantics<arbitrary>], iteration_bounds = array<i64: 1, 1, 1>, scalar_prefetch = 0 : i64, scratch_operands = 0 : i64, tpu.core_type = #tpu.core_type<tc>, window_params = [{transform_indices = @transform_0, window_bounds = array<i64: 8, 28>}, {transform_indices = @transform_1, window_bounds = array<i64: 8, 1>}, {transform_indices = @transform_2, window_bounds = array<i64: 512, 28>}, {transform_indices = @transform_3, window_bounds = array<i64: 2, 256>}, {transform_indices = @transform_4, window_bounds = array<i64: 1, 8, 1>}, {transform_indices = @transform_5, window_bounds = array<i64: 1, 8, 28>}]} {
    %c0_i32 = arith.constant 0 : i32
    %0 = arith.cmpi eq, %arg2, %c0_i32 : i32
    %1 = arith.extui %0 : i1 to i32
    %c0_i32_0 = arith.constant 0 : i32
    %2 = arith.cmpi ne, %1, %c0_i32_0 : i32
    scf.if %2 {
      %cst_33 = arith.constant 0.000000e+00 : f32
      %65 = vector.broadcast %cst_33 : f32 to vector<8x1xf32>
      %c0_34 = arith.constant 0 : index
      %c0_35 = arith.constant 0 : index
      %c0_36 = arith.constant 0 : index
      %66 = vector.load %arg7[%c0_34, %c0_35, %c0_36] : memref<1x8x1xf32, #tpu.memory_space<vmem>>, vector<1x8x1xf32>
      %67 = vector.shape_cast %66 : vector<1x8x1xf32> to vector<8x1xf32>
      %68 = vector.shape_cast %65 : vector<8x1xf32> to vector<1x8x1xf32>
      tpu.vector_store %arg7[%c0_34, %c0_35, %c0_36], %68 {strides = array<i32>} : memref<1x8x1xf32, #tpu.memory_space<vmem>>, vector<1x8x1xf32>,
      %cst_37 = arith.constant 0.000000e+00 : f32
      %69 = vector.broadcast %cst_37 : f32 to vector<8x28xf32>
      %c0_38 = arith.constant 0 : index
      %c0_39 = arith.constant 0 : index
      %c0_40 = arith.constant 0 : index
      %70 = vector.load %arg8[%c0_38, %c0_39, %c0_40] : memref<1x8x28xf32, #tpu.memory_space<vmem>>, vector<1x8x28xf32>
      %71 = vector.shape_cast %70 : vector<1x8x28xf32> to vector<8x28xf32>
      %72 = vector.shape_cast %69 : vector<8x28xf32> to vector<1x8x28xf32>
      tpu.vector_store %arg8[%c0_38, %c0_39, %c0_40], %72 {strides = array<i32>} : memref<1x8x28xf32, #tpu.memory_space<vmem>>, vector<1x8x28xf32>,
    } else {
    }
    %c0 = arith.constant 0 : index
    %c0_1 = arith.constant 0 : index
    %3 = vector.load %arg3[%c0, %c0_1] : memref<8x28xf32, #tpu.memory_space<vmem>>, vector<8x28xf32>
    %c0_2 = arith.constant 0 : index
    %c0_3 = arith.constant 0 : index
    %4 = vector.load %arg4[%c0_2, %c0_3] : memref<8x1xf32, #tpu.memory_space<vmem>>, vector<8x1xf32>
    %c0_4 = arith.constant 0 : index
    %c0_5 = arith.constant 0 : index
    %5 = vector.load %arg5[%c0_4, %c0_5] : memref<512x28xbf16, #tpu.memory_space<vmem>>, vector<512x28xbf16>
    %6 = arith.extf %5 : vector<512x28xbf16> to vector<512x28xf32>
    %c0_6 = arith.constant 0 : index
    %c0_7 = arith.constant 0 : index
    %7 = vector.load %arg6[%c0_6, %c0_7] : memref<2x256xf32, #tpu.memory_space<vmem>>, vector<2x256xf32>
    %8 = vector.extract_strided_slice %7 {offsets = [0, 0], sizes = [1, 256], strides = [1, 1]} : vector<2x256xf32> to vector<1x256xf32>
    %9 = vector.extract_strided_slice %7 {offsets = [1, 0], sizes = [1, 256], strides = [1, 1]} : vector<2x256xf32> to vector<1x256xf32>
    %cst = arith.constant dense<0.000000e+00> : vector<8x512xf32>
    %10 = tpu.matmul %3, %6, %cst {dimension_numbers = #tpu.dot_dimension_numbers<[1], [1], [0], [0], [0, 0, 1, 0], [], []>} : vector<8x28xf32>, vector<512x28xf32>, vector<8x512xf32> -> vector<8x512xf32>
    %11 = vector.extract_strided_slice %10 {offsets = [0, 0], sizes = [8, 256], strides = [1, 1]} : vector<8x512xf32> to vector<8x256xf32>
    %12 = vector.extract_strided_slice %10 {offsets = [0, 256], sizes = [8, 256], strides = [1, 1]} : vector<8x512xf32> to vector<8x256xf32>
    %13 = vector.broadcast %4 : vector<8x1xf32> to vector<8x256xf32>
    %14 = vector.broadcast %8 : vector<1x256xf32> to vector<8x256xf32>
    %15 = arith.addf %13, %14 : vector<8x256xf32>
    %cst_8 = arith.constant 2.000000e+00 : f32
    %16 = vector.broadcast %cst_8 : f32 to vector<8x256xf32>
    %17 = arith.mulf %16, %11 : vector<8x256xf32>
    %18 = arith.subf %15, %17 : vector<8x256xf32>
    %cst_9 = arith.constant 0.000000e+00 : f32
    %19 = vector.broadcast %cst_9 : f32 to vector<8x256xf32>
    %20 = arith.maximumf %18, %19 : vector<8x256xf32>
    %cst_10 = arith.constant 5.000000e+00 : f32
    %21 = vector.broadcast %cst_10 : f32 to vector<8x256xf32>
    %22 = arith.mulf %21, %20 : vector<8x256xf32>
    %23 = math.sqrt %22 : vector<8x256xf32>
    %cst_11 = arith.constant 0.000000e+00 : f32
    %24 = vector.broadcast %cst_11 : f32 to vector<8x256xf32>
    %25 = arith.subf %24, %23 : vector<8x256xf32>
    %cst_12 = arith.constant 1.000000e-01 : f32
    %26 = vector.broadcast %cst_12 : f32 to vector<8x256xf32>
    %27 = arith.mulf %25, %26 : vector<8x256xf32>
    %28 = math.exp %27 : vector<8x256xf32>
    %cst_13 = arith.constant 0.00166666671 : f32
    %29 = vector.broadcast %cst_13 : f32 to vector<8x256xf32>
    %30 = arith.mulf %29, %28 : vector<8x256xf32>
    %31 = vector.broadcast %9 : vector<1x256xf32> to vector<8x256xf32>
    %32 = arith.subf %12, %31 : vector<8x256xf32>
    %cst_14 = arith.constant 1.000000e+01 : f32
    %33 = vector.broadcast %cst_14 : f32 to vector<8x256xf32>
    %34 = arith.addf %23, %33 : vector<8x256xf32>
    %35 = arith.mulf %34, %30 : vector<8x256xf32>
    %c0_15 = arith.constant 0 : index
    %c0_16 = arith.constant 0 : index
    %c0_17 = arith.constant 0 : index
    %36 = vector.load %arg7[%c0_15, %c0_16, %c0_17] : memref<1x8x1xf32, #tpu.memory_space<vmem>>, vector<1x8x1xf32>
    %37 = vector.shape_cast %36 : vector<1x8x1xf32> to vector<8x1xf32>
    %38 = arith.mulf %32, %35 : vector<8x256xf32>
    %cst_18 = arith.constant dense<0.000000e+00> : vector<8xf32>
    %39 = vector.multi_reduction <add>, %38, %cst_18 [1] : vector<8x256xf32> to vector<8xf32>
    %40 = vector.shape_cast %39 : vector<8xf32> to vector<8x1xf32>
    %41 = arith.addf %37, %40 : vector<8x1xf32>
    %c0_19 = arith.constant 0 : index
    %c0_20 = arith.constant 0 : index
    %c0_21 = arith.constant 0 : index
    %42 = vector.load %arg7[%c0_19, %c0_20, %c0_21] : memref<1x8x1xf32, #tpu.memory_space<vmem>>, vector<1x8x1xf32>
    %43 = vector.shape_cast %42 : vector<1x8x1xf32> to vector<8x1xf32>
    %44 = vector.shape_cast %41 : vector<8x1xf32> to vector<1x8x1xf32>
    tpu.vector_store %arg7[%c0_19, %c0_20, %c0_21], %44 {strides = array<i32>} : memref<1x8x1xf32, #tpu.memory_space<vmem>>, vector<1x8x1xf32>,
    %45 = arith.mulf %30, %32 : vector<8x256xf32>
    %cst_22 = arith.constant dense<0.000000e+00> : vector<8xf32>
    %46 = vector.multi_reduction <add>, %45, %cst_22 [1] : vector<8x256xf32> to vector<8xf32>
    %47 = vector.shape_cast %46 : vector<8xf32> to vector<8x1xf32>
    %cst_23 = arith.constant -5.000000e-01 : f32
    %48 = vector.broadcast %cst_23 : f32 to vector<8x256xf32>
    %49 = arith.mulf %45, %48 : vector<8x256xf32>
    %cst_24 = arith.constant 0.000000e+00 : f32
    %50 = vector.broadcast %cst_24 : f32 to vector<8x256xf32>
    %51 = arith.subf %50, %35 : vector<8x256xf32>
    %52 = tpu.concatenate %49, %51 in 1 : vector<8x256xf32>, vector<8x256xf32> -> vector<8x512xf32>
    %c0_25 = arith.constant 0 : index
    %c0_26 = arith.constant 0 : index
    %c0_27 = arith.constant 0 : index
    %53 = vector.load %arg8[%c0_25, %c0_26, %c0_27] : memref<1x8x28xf32, #tpu.memory_space<vmem>>, vector<1x8x28xf32>
    %54 = vector.shape_cast %53 : vector<1x8x28xf32> to vector<8x28xf32>
    %cst_28 = arith.constant 5.000000e-01 : f32
    %55 = vector.broadcast %cst_28 : f32 to vector<8x1xf32>
    %56 = arith.mulf %55, %47 : vector<8x1xf32>
    %57 = vector.broadcast %56 : vector<8x1xf32> to vector<8x28xf32>
    %58 = arith.mulf %57, %3 : vector<8x28xf32>
    %cst_29 = arith.constant dense<0.000000e+00> : vector<8x28xf32>
    %59 = tpu.matmul %52, %6, %cst_29 {dimension_numbers = #tpu.dot_dimension_numbers<[1], [0], [0], [1], [0, 0, 1, 1], [], []>} : vector<8x512xf32>, vector<512x28xf32>, vector<8x28xf32> -> vector<8x28xf32>
    %60 = arith.addf %58, %59 : vector<8x28xf32>
    %61 = arith.addf %54, %60 : vector<8x28xf32>
    %c0_30 = arith.constant 0 : index
    %c0_31 = arith.constant 0 : index
    %c0_32 = arith.constant 0 : index
    %62 = vector.load %arg8[%c0_30, %c0_31, %c0_32] : memref<1x8x28xf32, #tpu.memory_space<vmem>>, vector<1x8x28xf32>
    %63 = vector.shape_cast %62 : vector<1x8x28xf32> to vector<8x28xf32>
    %64 = vector.shape_cast %61 : vector<8x28xf32> to vector<1x8x28xf32>
    tpu.vector_store %arg8[%c0_30, %c0_31, %c0_32], %64 {strides = array<i32>} : memref<1x8x28xf32, #tpu.memory_space<vmem>>, vector<1x8x28xf32>,
    return
  }
  func.func @transform_0(%arg0: i32, %arg1: i32, %arg2: i32) -> (i32, i32) {
    %c0_i32 = arith.constant 0 : i32
    %c0_i32_0 = arith.constant 0 : i32
    return %arg0, %c0_i32 : i32, i32
  }
  func.func @transform_1(%arg0: i32, %arg1: i32, %arg2: i32) -> (i32, i32) {
    %c0_i32 = arith.constant 0 : i32
    %c0_i32_0 = arith.constant 0 : i32
    return %arg0, %c0_i32 : i32, i32
  }
  func.func @transform_2(%arg0: i32, %arg1: i32, %arg2: i32) -> (i32, i32) {
    %c1_i32 = arith.constant 1 : i32
    %0 = arith.muli %arg1, %c1_i32 : i32
    %1 = arith.addi %0, %arg2 : i32
    %c0_i32 = arith.constant 0 : i32
    %c0_i32_0 = arith.constant 0 : i32
    return %1, %c0_i32 : i32, i32
  }
  func.func @transform_3(%arg0: i32, %arg1: i32, %arg2: i32) -> (i32, i32) {
    %c1_i32 = arith.constant 1 : i32
    %0 = arith.muli %arg1, %c1_i32 : i32
    %1 = arith.addi %0, %arg2 : i32
    %c0_i32 = arith.constant 0 : i32
    %c0_i32_0 = arith.constant 0 : i32
    return %c0_i32, %1 : i32, i32
  }
  func.func @transform_4(%arg0: i32, %arg1: i32, %arg2: i32) -> (i32, i32, i32) {
    %c0_i32 = arith.constant 0 : i32
    %c0_i32_0 = arith.constant 0 : i32
    return %arg1, %arg0, %c0_i32 : i32, i32, i32
  }
  func.func @transform_5(%arg0: i32, %arg1: i32, %arg2: i32) -> (i32, i32, i32) {
    %c0_i32 = arith.constant 0 : i32
    %c0_i32_0 = arith.constant 0 : i32
    return %arg1, %arg0, %c0_i32 : i32, i32, i32
  }
}

</mosaic_0001>

<bundles_post_ra>
// kernel: gdml_forward.1
= control target key start
LH: loop header
LB: loop body
LE: loop exit
PB: predicated region body
PF: predicated region fallthrough
CT: control target
= control target key end

     0   :  { %vm69_vm0 = vcmask 228352   ;;  %v1180_v2 = vmov 0   ;;  %vm67_vm5 = vcmask 7168   ;;  %s1796_s2 = inlined_call_operand.vmem [shape: bf16[512,28], index: 2, kind: input, shape index: {}]   ;;  %s1797_s0 = inlined_call_operand.vmem [shape: f32[8,28], index: 0, kind: input, shape index: {}]   ;;  %s1798_s1 = inlined_call_operand.vmem [shape: f32[8,1], index: 1, kind: input, shape index: {}]   ;;  %s1799_s3 = inlined_call_operand.vmem [shape: f32[2,256], index: 3, kind: input, shape index: {}]   ;;  %s1800_s4 = inlined_call_operand.vmem [shape: f32[1,8,1], index: 4, kind: output, shape index: {0}]   ;;  %s1801_s5 = inlined_call_operand.vmem [shape: f32[1,8,28], index: 5, kind: output, shape index: {1}]  }
   0x1   :  { %v1215_v0 = vld [vmem:[%s1796_s2 + $0x78] sm:$0xff]   ;;  %1171 = vset.pattern.permute.xlu0 %v1180_v2  ;;  %v1228_v6 = vld [vmem:[%s1796_s2 + $0x70] sm:$0xff]   ;;  %v1262_v15 = vld [vmem:[%s1797_s0] sm:$0xff] }
   0x2   :  { %v1220_v1 = vld [vmem:[%s1796_s2 + $0x38] sm:$0xff]   ;;  %v934_v3 = vunpack.c.l.bf16 %v1215_v0  ;;  %v935_v4 = vunpack.c.h.bf16 %v1215_v0  ;;  %v931_v10 = vunpack.c.h.bf16 %v1228_v6  ;;  %v1254_v11 = vld [vmem:[%s1796_s2 + $0x30] sm:$0xff]   ;;  %1063 = vmatprep.mubr.msk.f32.mxu0 %vm69_vm0, %v1262_v15  ;;  %v930_v18 = vunpack.c.l.bf16 %v1228_v6  ;;  %v1285_v19 = vld [vmem:[%s1796_s2 + $0x68] sm:$0xff]   ;;  %1097 = vmatprep.mubr.msk.f32.mxu1 %vm69_vm0, %v1262_v15 }
   0x3   :  { %v903_v5 = vunpack.c.h.bf16 %v1220_v1  ;;  %v902_v7 = vunpack.c.l.bf16 %v1220_v1  ;;  %v1240_v8 = vld [vmem:[%s1796_s2 + $0xf8] sm:$0xff]   ;;  %v899_v16 = vunpack.c.h.bf16 %v1254_v11  ;;  %v1271_v17 = vld [vmem:[%s1796_s2 + $0xf0] sm:$0xff]   ;;  %v72_v23 = vld [vmem:[%s1798_s1] sm:$0xff]  ;;  %v898_v24 = vunpack.c.l.bf16 %v1254_v11 }
   0x4   :  { %1031 = vmatprep.subr.msk.mxu0 %vm69_vm0, %v935_v4  ;;  %v1245_v9 = vld [vmem:[%s1796_s2 + $0xb8] sm:$0xff]   ;;  %v998_v12 = vunpack.c.l.bf16 %v1240_v8  ;;  %v999_v13 = vunpack.c.h.bf16 %v1240_v8  ;;  %v995_v21 = vunpack.c.h.bf16 %v1271_v17  ;;  %v1300_v22 = vld [vmem:[%s1796_s2 + $0xb0] sm:$0xff]   ;;  %542 = vperm.xlu0 %1171, %v72_v23   ;;  %v927_v25 = vunpack.c.h.bf16 %v1285_v19  ;;  %v1316_v26 = vld [vmem:[%s1796_s2 + $0x28] sm:$0xff]  }
   0x5   :  { %1032 = vmatpush3.xpose.msk.msra.mxu0 %vm69_vm0, %v903_v5  ;;  %v967_v14 = vunpack.c.h.bf16 %v1245_v9  ;;  %v966_v20 = vunpack.c.l.bf16 %v1245_v9  ;;  %v963_v27 = vunpack.c.h.bf16 %v1300_v22  ;;  %v994_v28 = vunpack.c.l.bf16 %v1271_v17  ;;  %v1333_v30 = vld [vmem:[%s1796_s2 + $0xe8] sm:$0xff]   ;;  %v1342_v32 = vld [vmem:[%s1796_s2 + $0x60] sm:$0xff]   ;;  %v1394_v44 = vld [vmem:[%s1796_s2 + $0x58] sm:$0xff]  }
   0x6   :  { %1033 = vmatprep.subr.msk.mxu0 %vm69_vm0, %v934_v3  ;;  %1065 = vmatprep.subr.msk.mxu1 %vm69_vm0, %v999_v13  ;;  %v895_v29 = vunpack.c.h.bf16 %v1316_v26  ;;  %v926_v31 = vunpack.c.l.bf16 %v1285_v19  ;;  %v962_v33 = vunpack.c.l.bf16 %v1300_v22  ;;  %v991_v34 = vunpack.c.h.bf16 %v1333_v30  ;;  %v1355_v35 = vld [vmem:[%s1796_s2 + $0xa8] sm:$0xff]   ;;  %v1368_v38 = vld [vmem:[%s1796_s2 + $0x20] sm:$0xff]   ;;  %v1420_v50 = vld [vmem:[%s1796_s2 + $0x18] sm:$0xff]  }
   0x7   :  { %1066 = vmatpush3.xpose.msk.msra.mxu1 %vm69_vm0, %v967_v14  ;;  %v894_v36 = vunpack.c.l.bf16 %v1316_v26  ;;  %v923_v37 = vunpack.c.h.bf16 %v1342_v32  ;;  %v1830_v39 = vunpack.c.h.bf16 %v1355_v35  ;;  %v1823_v40 = vunpack.c.l.bf16 %v1333_v30  ;;  %v1385_v42 = vld [vmem:[%s1796_s2 + $0xe0] sm:$0xff]   ;;  %v1437_v54 = vld [vmem:[%s1796_s2 + $0xd8] sm:$0xff]   ;;  %v1446_v56 = vld [vmem:[%s1796_s2 + $0x50] sm:$0xff]  }
   0x8   :  { %1067 = vmatprep.subr.msk.mxu1 %vm69_vm0, %v998_v12  ;;  %v891_v41 = vunpack.c.h.bf16 %v1368_v38  ;;  %v922_v43 = vunpack.c.l.bf16 %v1342_v32  ;;  %v1818_v45 = vunpack.c.l.bf16 %v1355_v35  ;;  %v1811_v46 = vunpack.c.h.bf16 %v1385_v42  ;;  %v1407_v47 = vld [vmem:[%s1796_s2 + $0xa0] sm:$0xff]   ;;  %v1459_v59 = vld [vmem:[%s1796_s2 + $0x98] sm:$0xff]   ;;  %v1472_v62 = vld [vmem:[%s1796_s2 + $0x10] sm:$0xff]  }
   0x9   :  { %1034 = vmatpush3.xpose.msk.msra.mxu0 %vm69_vm0, %v902_v7  ;;  %v1826_v48 = vunpack.c.l.bf16 %v1368_v38  ;;  %v1820_v49 = vunpack.c.h.bf16 %v1394_v44  ;;  %v1806_v51 = vunpack.c.h.bf16 %v1407_v47  ;;  %v1802_v52 = vunpack.c.l.bf16 %v1385_v42 }
   0xa   :  { %1035 = vmatprep.subr.msk.mxu0 %vm69_vm0, %v931_v10  ;;  %v1814_v53 = vunpack.c.h.bf16 %v1420_v50  ;;  %v1808_v55 = vunpack.c.l.bf16 %v1394_v44  ;;  %v1803_v57 = vunpack.c.l.bf16 %v1407_v47  ;;  %v1804_v58 = vunpack.c.h.bf16 %v1437_v54 }
   0xb   :  { %1068 = vmatpush3.xpose.msk.msra.mxu1 %vm69_vm0, %v966_v20  ;;  %v1805_v60 = vunpack.c.l.bf16 %v1420_v50  ;;  %v1807_v61 = vunpack.c.h.bf16 %v1446_v56  ;;  %v1809_v63 = vunpack.c.h.bf16 %v1459_v59  ;;  %v1810_v2 = vunpack.c.l.bf16 %v1437_v54 }
   0xc   :  { %1069 = vmatprep.subr.msk.mxu1 %vm69_vm0, %v995_v21  ;;  %v1812_v23 = vunpack.c.h.bf16 %v1472_v62  ;;  %v1835_v0 = vunpack.c.h.bf16 %v1355_v35  ;;  %v1836_v1 = vunpack.c.l.bf16 %v1368_v38  ;;  %v1840_v6 = vunpack.c.h.bf16 %v1420_v50 }
   0xd   :  { %1036 = vmatpush3.xpose.msk.msra.mxu0 %vm69_vm0, %v899_v16  ;;  %v1842_v8 = vunpack.c.l.bf16 %v1394_v44  ;;  %v1843_v9 = vunpack.c.h.bf16 %v1407_v47  ;;  %v1845_v11 = vunpack.c.l.bf16 %v1385_v42  ;;  %v1850_v17 = vunpack.c.l.bf16 %v1446_v56 }
   0xe   :  { %1037 = vmatprep.subr.msk.mxu0 %vm69_vm0, %v930_v18  ;;  %v1852_v19 = vunpack.c.l.bf16 %v1472_v62  ;;  %v1855_v22 = vunpack.c.l.bf16 %v1459_v59 }
   0xf   :  { %1070 = vmatpush3.xpose.msk.msra.mxu1 %vm69_vm0, %v963_v27 }
  0x10   :  { %1071 = vmatprep.subr.msk.mxu1 %vm69_vm0, %v994_v28 }
  0x11   :  { %1038 = vmatpush3.xpose.msk.msra.mxu0 %vm69_vm0, %v898_v24 }
  0x12   :  { %1039 = vmatprep.subr.msk.mxu0 %vm69_vm0, %v927_v25 }
  0x13   :  { %1072 = vmatpush3.xpose.msk.msra.mxu1 %vm69_vm0, %v962_v33 }
  0x14   :  { %1073 = vmatprep.subr.msk.mxu1 %vm69_vm0, %v991_v34 }
  0x15   :  { %1040 = vmatpush3.xpose.msk.msra.mxu0 %vm69_vm0, %v895_v29 }
  0x16   :  { %1041 = vmatprep.subr.msk.mxu0 %vm69_vm0, %v926_v31 }
  0x17   :  { %1074 = vmatpush3.xpose.msk.msra.mxu1 %vm69_vm0, %v1830_v39  ;;  %v1610_v39 = vld [vmem:[%s1796_s2 + $0x80] sm:$0xff]  }
  0x18   :  { %1075 = vmatprep.subr.msk.mxu1 %vm69_vm0, %v1823_v40 }
  0x19   :  { %1042 = vmatpush3.xpose.msk.msra.mxu0 %vm69_vm0, %v894_v36 }
  0x1a   :  { %1043 = vmatprep.subr.msk.mxu0 %vm69_vm0, %v923_v37 }
  0x1b   :  { %1076 = vmatpush3.xpose.msk.msra.mxu1 %vm69_vm0, %v1818_v45 }
  0x1c   :  { %1077 = vmatprep.subr.msk.mxu1 %vm69_vm0, %v1811_v46 }
  0x1d   :  { %1044 = vmatpush3.xpose.msk.msra.mxu0 %vm69_vm0, %v891_v41 }
  0x1e   :  { %1045 = vmatprep.subr.msk.mxu0 %vm69_vm0, %v922_v43 }
  0x1f   :  { %1078 = vmatpush3.xpose.msk.msra.mxu1 %vm69_vm0, %v1806_v51 }
  0x20   :  { %1079 = vmatprep.subr.msk.mxu1 %vm69_vm0, %v1802_v52  ;;  %v1489_v52 = vld [vmem:[%s1796_s2 + $0xd0] sm:$0xff]  }
  0x21   :  { %1046 = vmatpush3.xpose.msk.msra.mxu0 %vm69_vm0, %v1826_v48  ;;  %v1816_v51 = vunpack.c.h.bf16 %v1489_v52  ;;  %v1593_v48 = vld [vmem:[%s1796_s2 + $0xc0] sm:$0xff]  }
  0x22   :  { %1047 = vmatprep.subr.msk.mxu0 %vm69_vm0, %v1820_v49 }
  0x23   :  { %1080 = vmatpush3.xpose.msk.msra.mxu1 %vm69_vm0, %v1803_v57  ;;  %v1813_v57 = vunpack.c.l.bf16 %v1446_v56 }
  0x24   :  { %1081 = vmatprep.subr.msk.mxu1 %vm69_vm0, %v1804_v58  ;;  %v1498_v58 = vld [vmem:[%s1796_s2 + $0x48] sm:$0xff]  }
  0x25   :  { %1048 = vmatpush3.xpose.msk.msra.mxu0 %vm69_vm0, %v1814_v53  ;;  %v1541_v53 = vld [vmem:[%s1796_s2 + $0xc8] sm:$0xff]   ;;  %v1858_v26 = vunpack.c.l.bf16 %v1498_v58 }
  0x26   :  { %1049 = vmatprep.subr.msk.mxu0 %vm69_vm0, %v1808_v55  ;;  %v1817_v55 = vunpack.c.l.bf16 %v1472_v62  ;;  %v1828_v45 = vunpack.c.h.bf16 %v1541_v53  ;;  %v1864_v32 = vunpack.c.h.bf16 %v1541_v53 }
  0x27   :  { %1082 = vmatpush3.xpose.msk.msra.mxu1 %vm69_vm0, %v1809_v63  ;;  %v1819_v63 = vunpack.c.h.bf16 %v1498_v58 }
  0x28   :  { %1083 = vmatprep.subr.msk.mxu1 %vm69_vm0, %v1810_v2  ;;  %v1524_v2 = vld [vmem:[%s1796_s2 + $0x8] sm:$0xff]  }
  0x29   :  { %1050 = vmatpush3.xpose.msk.msra.mxu0 %vm69_vm0, %v1805_v60  ;;  %v1815_v60 = vunpack.c.l.bf16 %v1459_v59  ;;  %v1829_v49 = vunpack.c.l.bf16 %v1524_v2 }
  0x2a   :  { %1051 = vmatprep.subr.msk.mxu0 %vm69_vm0, %v1807_v61  ;;  %v1511_v61 = vld [vmem:[%s1796_s2 + $0x90] sm:$0xff]  }
  0x2b   :  { %1084 = vmatpush3.xpose.msk.msra.mxu1 %vm69_vm0, %v1815_v60  ;;  %v1821_v46 = vunpack.c.h.bf16 %v1511_v61  ;;  %v1825_v60 = vunpack.c.l.bf16 %v1498_v58 }
  0x2c   :  { %1085 = vmatprep.subr.msk.mxu1 %vm69_vm0, %v1816_v51  ;;  %v1550_v51 = vld [vmem:[%s1796_s2 + $0x40] sm:$0xff]  }
  0x2d   :  { %1052 = vmatpush3.xpose.msk.msra.mxu0 %vm69_vm0, %v1812_v23  ;;  %v1822_v23 = vunpack.c.l.bf16 %v1489_v52 }
  0x2e   :  { %1053 = vmatprep.subr.msk.mxu0 %vm69_vm0, %v1813_v57  ;;  %v1824_v57 = vunpack.c.h.bf16 %v1524_v2 }
  0x2f   :  { %1086 = vmatpush3.xpose.msk.msra.mxu1 %vm69_vm0, %v1821_v46  ;;  %v1831_v46 = vunpack.c.h.bf16 %v1550_v51 }
  0x30   :  { %1087 = vmatprep.subr.msk.mxu1 %vm69_vm0, %v1822_v23  ;;  %v1576_v23 = vld [vmem:[%s1796_s2] sm:$0xff]  }
  0x31   :  { %1054 = vmatpush3.xpose.msk.msra.mxu0 %vm69_vm0, %v1817_v55  ;;  %v1827_v55 = vunpack.c.l.bf16 %v1511_v61 }
  0x32   :  { %1055 = vmatprep.subr.msk.mxu0 %vm69_vm0, %v1819_v63  ;;  %v1563_v63 = vld [vmem:[%s1796_s2 + $0x88] sm:$0xff]  }
  0x33   :  { %1088 = vmatpush3.xpose.msk.msra.mxu1 %vm69_vm0, %v1827_v55  ;;  %v1833_v40 = vunpack.c.h.bf16 %v1563_v63  ;;  %v906_v55 = vunpack.c.l.bf16 %v1550_v51 }
  0x34   :  { %1089 = vmatprep.subr.msk.mxu1 %vm69_vm0, %v1828_v45  ;;  %v1834_v45 = vunpack.c.l.bf16 %v1563_v63 }
  0x35   :  { %1056 = vmatpush3.xpose.msk.msra.mxu0 %vm69_vm0, %v1824_v57  ;;  %v1832_v57 = vunpack.c.l.bf16 %v1541_v53 }
  0x36   :  { %1057 = vmatprep.subr.msk.mxu0 %vm69_vm0, %v1825_v60  ;;  %v875_v60 = vunpack.c.h.bf16 %v1576_v23 }
  0x37   :  { %1090 = vmatpush3.xpose.msk.msra.mxu1 %vm69_vm0, %v1833_v40  ;;  %v970_v40 = vunpack.c.l.bf16 %v1593_v48 }
  0x38   :  { %1091 = vmatprep.subr.msk.mxu1 %vm69_vm0, %v1832_v57  ;;  %v939_v57 = vunpack.c.h.bf16 %v1610_v39 }
  0x39   :  { %1058 = vmatpush3.xpose.msk.msra.mxu0 %vm69_vm0, %v1829_v49  ;;  %v971_v49 = vunpack.c.h.bf16 %v1593_v48 }
  0x3a   :  { %1059 = vmatprep.subr.msk.mxu0 %vm69_vm0, %v1831_v46  ;;  %v874_v46 = vunpack.c.l.bf16 %v1576_v23 }
  0x3b   :  { %1092 = vmatpush3.xpose.msk.msra.mxu1 %vm69_vm0, %v1834_v45  ;;  %v938_v45 = vunpack.c.l.bf16 %v1610_v39 }
  0x3c   :  { %1093 = vmatprep.subr.msk.mxu1 %vm69_vm0, %v971_v49 }
  0x3d   :  { %1060 = vmatpush3.xpose.msk.msra.mxu0 %vm69_vm0, %v875_v60 }
  0x3e   :  { %1061 = vmatprep.subr.msk.mxu0 %vm69_vm0, %v906_v55 }
  0x3f   :  { %1094 = vmatpush3.xpose.msk.msra.mxu1 %vm69_vm0, %v939_v57 }
  0x40   :  { %1095 = vmatprep.subr.msk.mxu1 %vm69_vm0, %v970_v40 }
  0x41   :  { %1062 = vmatpush3.xpose.msk.msra.mxu0 %vm69_vm0, %v874_v46 }
  0x42   :  { %1099 = vmatprep.subr.mxu0 %v935_v4  ;;  %v1838_v4 = vunpack.c.h.bf16 %v1394_v44 }
  0x43   :  { %1096 = vmatpush3.xpose.msk.msra.mxu1 %vm69_vm0, %v938_v45 }
  0x44   :  { %1064 = vmatmul.mubr.msk.f32.vlgmr.msra.gmra.mxu0 %vm69_vm0, %v1262_v15  ;;  %1134 = vmatprep.subr.mxu1 %v999_v13  ;;  %v1847_v13 = vunpack.c.l.bf16 %v1407_v47 }
  0x45   :  { %1100 = vmatpush3.msra.mxu0 %v903_v5  ;;  %v1839_v5 = vunpack.c.l.bf16 %v1355_v35  ;;  %v1867_v35 = vunpack.c.l.bf16 %v1563_v63 }
  0x46   :  { %1101 = vmatprep.subr.mxu0 %v934_v3  ;;  %1098 = vmatmul.mubr.msk.f32.vlgmr.msra.gmra.mxu1 %vm69_vm0, %v1262_v15  ;;  %v1837_v3 = vunpack.c.l.bf16 %v1333_v30  ;;  %v1862_v30 = vunpack.c.h.bf16 %v1550_v51 }
  0x47   :  { %1102 = vmatpush3.msra.mxu0 %v902_v7  ;;  %1135 = vmatpush3.msra.mxu1 %v967_v14  ;;  %v1841_v7 = vunpack.c.h.bf16 %v1385_v42  ;;  %v1848_v14 = vunpack.c.h.bf16 %v1472_v62 }
  0x48   :  { %1103 = vmatprep.subr.mxu0 %v931_v10  ;;  %1136 = vmatprep.subr.mxu1 %v998_v12  ;;  %v1844_v10 = vunpack.c.l.bf16 %v1420_v50  ;;  %v1846_v12 = vunpack.c.h.bf16 %v1446_v56 }
  0x49   :  { %1104 = vmatpush3.msra.mxu0 %v899_v16  ;;  %1137 = vmatpush3.msra.mxu1 %v966_v20  ;;  %v1849_v16 = vunpack.c.h.bf16 %v1437_v54  ;;  %v1853_v20 = vunpack.c.l.bf16 %v1437_v54 }
  0x4a   :  { %1105 = vmatprep.subr.mxu0 %v930_v18  ;;  %1138 = vmatprep.subr.mxu1 %v995_v21  ;;  %v1851_v18 = vunpack.c.h.bf16 %v1459_v59  ;;  %v1854_v21 = vunpack.c.h.bf16 %v1498_v58 }
  0x4b   :  { %1106 = vmatpush3.msra.mxu0 %v898_v24  ;;  %1139 = vmatpush3.msra.mxu1 %v963_v27  ;;  %v1856_v24 = vunpack.c.h.bf16 %v1524_v2  ;;  %v1859_v27 = vunpack.c.h.bf16 %v1511_v61 }
  0x4c   :  { %1107 = vmatprep.subr.mxu0 %v927_v25  ;;  %1140 = vmatprep.subr.mxu1 %v994_v28  ;;  %v1857_v25 = vunpack.c.h.bf16 %v1489_v52  ;;  %v1860_v28 = vunpack.c.l.bf16 %v1524_v2 }
  0x4d   :  { %1108 = vmatpush3.msra.mxu0 %v895_v29  ;;  %1141 = vmatpush3.msra.mxu1 %v962_v33  ;;  %v1861_v29 = vunpack.c.l.bf16 %v1489_v52  ;;  %v1865_v33 = vunpack.c.h.bf16 %v1563_v63 }
  0x4e   :  { %1109 = vmatprep.subr.mxu0 %v926_v31  ;;  %1142 = vmatprep.subr.mxu1 %v991_v34  ;;  %v1863_v31 = vunpack.c.l.bf16 %v1511_v61  ;;  %v1866_v34 = vunpack.c.l.bf16 %v1541_v53 }
  0x4f   :  { %1110 = vmatpush3.msra.mxu0 %v894_v36  ;;  %1143 = vmatpush3.msra.mxu1 %v1835_v0  ;;  %v546_v36 = vlaneseq }
  0x50   :  { %1111 = vmatprep.subr.mxu0 %v923_v37  ;;  %1144 = vmatprep.subr.mxu1 %v1837_v3 }
  0x51   :  { %1112 = vmatpush3.msra.mxu0 %v891_v41  ;;  %1145 = vmatpush3.msra.mxu1 %v1839_v5  ;;  %v547_v37 = vshrl.u32 %v546_v36, 7  ;;  %v201_v41 = vld [vmem:[%s1799_s3] sm:$0xf] }
  0x52   :  { %1113 = vmatprep.subr.mxu0 %v922_v43  ;;  %1146 = vmatprep.subr.mxu1 %v1841_v7 }
  0x53   :  { %1114 = vmatpush3.msra.mxu0 %v1836_v1  ;;  %1147 = vmatpush3.msra.mxu1 %v1843_v9  ;;  %v548_v38 = vsub.s32 0, %v547_v37  ;;  %v552_v42 = vsub.s32 2, %v547_v37  ;;  %v600_v9 = vsub.s32 1, %v547_v37 }
  0x54   :  { %1115 = vmatprep.subr.mxu0 %v1838_v4  ;;  %1148 = vmatprep.subr.mxu1 %v1845_v11 }
  0x55   :  { %1116 = vmatpush3.msra.mxu0 %v1840_v6  ;;  %1149 = vmatpush3.msra.mxu1 %v1847_v13  ;;  %v549_v43 = vrot.slane %v201_v41, %v548_v38  ;;  %v553_v44 = vrot.slane %v201_v41, %v552_v42  ;;  %v601_v11 = vrot.slane %v201_v41, %v600_v9 }
  0x56   :  { %1117 = vmatprep.subr.mxu0 %v1842_v8  ;;  %1150 = vmatprep.subr.mxu1 %v1849_v16 }
  0x57   :  { %1118 = vmatpush3.msra.mxu0 %v1844_v10  ;;  %1151 = vmatpush3.msra.mxu1 %v1851_v18  ;;  %v604_v10 = vsub.s32 3, %v547_v37 }
  0x58   :  { %1119 = vmatprep.subr.mxu0 %v1846_v12  ;;  %1152 = vmatprep.subr.mxu1 %v1853_v20 }
  0x59   :  { %1120 = vmatpush3.msra.mxu0 %v1848_v14  ;;  %1153 = vmatpush3.msra.mxu1 %v1855_v22  ;;  %v605_v12 = vrot.slane %v201_v41, %v604_v10  ;;  %v611_v14 = vrot.slane %v601_v11, %v600_v9  ;;  %v1181_v41 = vmov 0.0  }
  0x5a   :  { %1121 = vmatprep.subr.mxu0 %v1850_v17  ;;  %1154 = vmatprep.subr.mxu1 %v1857_v25  ;;  %68 = vst.msk [vmem:[%s1800_s4] sm:$0xff] %vm67_vm5, %v1181_v41 }
  0x5b   :  { %1122 = vmatpush3.msra.mxu0 %v1852_v19  ;;  %1155 = vmatpush3.msra.mxu1 %v1859_v27  ;;  %v615_v16 = vrot.slane %v605_v12, %v600_v9  ;;  %70 = vst.msk [vmem:[%s1801_s5] sm:$0xff] %vm69_vm0, %v1181_v41 }
  0x5c   :  { %1123 = vmatprep.subr.mxu0 %v1854_v21  ;;  %1156 = vmatprep.subr.mxu1 %v1861_v29 }
  0x5d   :  { %1124 = vmatpush3.msra.mxu0 %v1856_v24  ;;  %1157 = vmatpush3.msra.mxu1 %v1863_v31 }
  0x5e   :  { %1125 = vmatprep.subr.mxu0 %v1858_v26  ;;  %1158 = vmatprep.subr.mxu1 %v1864_v32 }
  0x5f   :  { %1126 = vmatpush3.msra.mxu0 %v1860_v28  ;;  %1159 = vmatpush3.msra.mxu1 %v1865_v33 }
  0x60   :  { %1127 = vmatprep.subr.mxu0 %v1862_v30  ;;  %1160 = vmatprep.subr.mxu1 %v1866_v34 }
  0x61   :  { %1128 = vmatpush3.msra.mxu0 %v875_v60  ;;  %1161 = vmatpush3.msra.mxu1 %v1867_v35  ;;  %v622_v42 = vld [vmem:[%s1800_s4] sm:$0xff] }
  0x62   :  { %1129 = vmatprep.subr.mxu0 %v906_v55  ;;  %1162 = vmatprep.subr.mxu1 %v971_v49  ;;  %v563_v49 = vrot.slane %v553_v44, %v548_v38 }
  0x63   :  { %1130 = vmatpush3.msra.mxu0 %v874_v46  ;;  %1163 = vmatpush3.msra.mxu1 %v939_v57  ;;  %v559_v46 = vrot.slane %v549_v43, %v548_v38 }
  0x64   :  { %1164 = vmatprep.subr.mxu1 %v970_v40 }
  0x65   :  { %1165 = vmatpush3.msra.mxu1 %v938_v45 }
  0x7f   :  { %v543_v47 = vpop.permute.xlu0 %542 }
  0x80   :  { %v564_v50 = vadd.f32 %v559_v46, %v543_v47  ;;  %v565_v48 = vadd.f32 %v563_v49, %v543_v47 }
 0x104   :  { %v464_v51 = vpop.f32.mrf.mxu0 }
 0x105   :  { %v566_v40 = vmul.f32 2.0, %v464_v51 }
 0x106   :  { %v466_v52 = vpop.f32.mrf.mxu0  ;;  %v535_v13 = vpop.f32.mrf.mxu1 }
 0x107   :  { %v568_v39 = vsub.f32 %v564_v50, %v566_v40  ;;  %v567_v45 = vmul.f32 2.0, %v466_v52  ;;  %v616_v18 = vsub.f32 %v535_v13, %v611_v14 }
 0x108   :  { %v537_v19 = vpop.f32.mrf.mxu1 }
 0x109   :  { %v570_v53 = vmax.f32 %v568_v39, 0.0  ;;  %v569_v54 = vsub.f32 %v565_v48, %v567_v45  ;;  %v617_v26 = vsub.f32 %v537_v19, %v615_v16 }
 0x10b   :  { %v572_v55 = vmul.f32 5.0, %v570_v53  ;;  %v571_v56 = vmax.f32 %v569_v54, 0.0  ;;  %v640_v53 = vld [vmem:[%s1801_s5] sm:$0xff] }
 0x10d   :  { %1172 = vrsqrt.f32 %v572_v55  ;;  %v573_v57 = vmul.f32 5.0, %v571_v56  ;;  %vm576_vm1 = vcmp.eq.f32.partialorder %v572_v55, inf  ;;  %v579_v61 = vand.u32 2147483648, %v572_v55 }
 0x10e   :  { %vm578_vm2 = vcmp.eq.f32.partialorder %v572_v55, 0.0 }
 0x10f   :  { %1174 = vrsqrt.f32 %v573_v57  ;;  %vm583_vm3 = vcmp.eq.f32.partialorder %v573_v57, inf  ;;  %v586_v23 = vand.u32 2147483648, %v573_v57  ;;  %vm585_vm4 = vcmp.eq.f32.partialorder %v573_v57, 0.0 }
 0x11a   :  { %v1173_v58 = vpop.eup %1172 }
 0x11b   :  { %v575_v59 = vmul.f32 %v1173_v58, %v572_v55 }
 0x11c   :  { %v1175_v60 = vpop.eup %1174 }
 0x11d   :  { %v577_v62 = vsel %vm576_vm1, %v572_v55, %v575_v59  ;;  %v582_v63 = vmul.f32 %v1175_v60, %v573_v57 }
 0x11e   :  { %v580_v2 = vsel %vm578_vm2, %v579_v61, %v577_v62 }
 0x11f   :  { %v588_v0 = vsub.f32 0.0, %v580_v2  ;;  %v584_v1 = vsel %vm583_vm3, %v573_v57, %v582_v63  ;;  %v618_v21 = vadd.f32 10.0, %v580_v2 }
 0x120   :  { %v587_v3 = vsel %vm585_vm4, %v586_v23, %v584_v1 }
 0x121   :  { %v590_v4 = vmul.f32 0.1, %v588_v0  ;;  %v589_v5 = vsub.f32 0.0, %v587_v3  ;;  %v619_v27 = vadd.f32 10.0, %v587_v3 }
 0x123   :  { %v592_v6 = vmul.f32 1.442695, %v590_v4  ;;  %v591_v7 = vmul.f32 0.1, %v589_v5 }
 0x125   :  { %1176 = vpow2.f32 %v592_v6  ;;  %v594_v8 = vmul.f32 1.442695, %v591_v7 }
 0x127   :  { %1178 = vpow2.f32 %v594_v8 }
 0x132   :  { %v1177_v17 = vpop.eup %1176 }
 0x133   :  { %v596_v20 = vmul.f32 0.0016666667, %v1177_v17 }
 0x134   :  { %v1179_v22 = vpop.eup %1178 }
 0x135   :  { %v620_v24 = vmul.f32 %v618_v21, %v596_v20  ;;  %v597_v25 = vmul.f32 0.0016666667, %v1179_v22  ;;  %v631_v28 = vmul.f32 %v616_v18, %v596_v20 }
 0x137   :  { %v632_v29 = vmul.f32 %v617_v26, %v597_v25  ;;  %v621_v30 = vmul.f32 %v619_v27, %v597_v25  ;;  %v623_v31 = vmul.f32 %v620_v24, %v616_v18  ;;  %v636_v36 = vmul.f32 -0.5, %v631_v28 }
 0x138   :  { %v638_v37 = vsub.f32 0.0, %v620_v24 }
 0x139   :  { %v637_v32 = vmul.f32 -0.5, %v632_v29  ;;  %v633_v33 = vadd.f32 %v632_v29, %v631_v28  ;;  %v639_v34 = vsub.f32 0.0, %v621_v30  ;;  %v624_v35 = vmul.f32 %v621_v30, %v617_v26 }
 0x13b   :  { %707 = vmatprep.mubr.f32.mxu0 %v637_v32  ;;  %634 = vadd.xlane.f32.xlu0 %v633_v33  ;;  %v625_v38 = vadd.f32 %v624_v35, %v623_v31 }
 0x13c   :  { %777 = vmatprep.mubr.f32.mxu1 %v639_v34  ;;  %708 = vmatmul.mubr.f32.vlgmr.msra.gmra.mxu0 %v636_v36 }
 0x13d   :  { %778 = vmatmul.mubr.f32.vlgmr.msra.gmra.mxu1 %v638_v37  ;;  %626 = vadd.xlane.f32.xlu1 %v625_v38 }
 0x1c4   :  { %v635_v46 = vpop.xlane.xlu0 %634 }
 0x1c5   :  { %v641_v50 = vmul.f32 0.5, %v635_v46 }
 0x1c6   :  { %v627_v43 = vpop.xlane.xlu1 %626 }
 0x1c7   :  { %v628_v44 = vadd.f32 %v627_v43, %v622_v42  ;;  %v642_v39 = vmul.f32 %v641_v50, %v1262_v15 }
 0x1c9   :  { %630 = vst.msk [vmem:[%s1800_s4] sm:$0xff] %vm67_vm5, %v628_v44 }
 0x1fc   :  { %v1131_v47 = vpop.f32.mrf.mxu0 }
 0x1fd   :  { %v1166_v49 = vpop.f32.mrf.mxu1 }
 0x1fe   :  { %v1132_v51 = vpop.f32.mrf.mxu0 }
 0x1ff   :  { %v1133_v48 = vadd.f32 %v1132_v51, %v1131_v47  ;;  %v1167_v40 = vpop.f32.mrf.mxu1 }
 0x200   :  { %v1168_v52 = vadd.f32 %v1167_v40, %v1166_v49 }
 0x202   :  { %v780_v45 = vadd.f32 %v1168_v52, %v1133_v48 }
 0x204   :  { %v783_v54 = vadd.f32 %v780_v45, %v642_v39 }
 0x206   :  { %v784_v55 = vadd.f32 %v783_v54, %v640_v53 }
 0x208   :  { %785 = vst.msk [vmem:[%s1801_s5] sm:$0xff] %vm69_vm0, %v784_v55 }

</bundles_post_ra>
